<compile_context>
chip_gen: v6e
topology: v6e:2x2x1
jax: 0.10.0
libtpu: 0.0.40
codegen_flags: <defaults>
</compile_context>

<pallas_src>
import functools
import math

import jax
import jax.numpy as jnp
from jax.experimental import pallas as pl
from jax.experimental.pallas import tpu as pltpu

_LN_EPS = 1e-5
_INV_SQRT2 = 0.7071067811865476
# Abramowitz & Stegun 7.1.26 erf coefficients (|abs err| ~ 1.5e-7).
_P = 0.3275911
_A1, _A2, _A3, _A4, _A5 = 0.254829592, -0.284496736, 1.421413741, -1.453152027, 1.061405429


def _layernorm(v, gamma, beta):
    mu = jnp.mean(v, axis=-1, keepdims=True)
    c = v - mu
    var = jnp.mean(c * c, axis=-1, keepdims=True)
    inv = jax.lax.rsqrt(var + _LN_EPS)          # single EUP op (no sqrt + divide)
    return c * inv * gamma + beta


def _gelu_exact(v, approx_recip):
    # PyTorch nn.GELU() default (erf-based).  Using erf oddness:
    #   gelu(v) = 0.5*(v + |v|) - 0.5*|v| * erfc(|v|/sqrt(2))
    # erfc on [0, inf) via A&S 7.1.26 — no sign select needed; the divide goes to the
    # EUP when approx_recip=True (fast path), keeping the VALU slot for the polynomial.
    av = jnp.abs(v)
    z = av * _INV_SQRT2
    t = pl.reciprocal(1.0 + _P * z, approx=approx_recip)
    poly = ((((_A5 * t + _A4) * t + _A3) * t + _A2) * t + _A1) * t
    q = poly * jnp.exp(-z * z)                   # == erfc(z) for z >= 0
    return 0.5 * (v + av) - 0.5 * av * q


def _mixer_kernel(x_ref, g1_ref, be1_ref, mk_ref, btok_ref,
                  g2_ref, be2_ref, w3t_ref, b3_ref, w4t_ref, b4_ref, o_ref,
                  *, cf_chunk, approx_recip):
    f32 = jnp.float32
    tn = o_ref.shape[1]                                     # row tile of the patch axis
    r0 = pl.multiple_of(pl.program_id(1) * tn, tn)          # first row of this tile

    # ---- token mixing:  x + (kron(W1, W2) @ LN1(x) + btok), rows [r0, r0+tn) ----
    x_full = x_ref[0].astype(f32)                           # (N, C): needed whole for the
    y = _layernorm(x_full, g1_ref[...], be1_ref[...])       # N-long contraction below
    mk_t = mk_ref[pl.ds(r0, tn), :]                         # (tn, N) rows of kron(W1, W2)
    tok = jnp.dot(mk_t, y.astype(mk_t.dtype), preferred_element_type=f32)
    x_t = x_ref[0, pl.ds(r0, tn), :].astype(f32)            # residual rows
    x1 = x_t + tok + btok_ref[pl.ds(r0, tn), :]             # (tn, C)

    # ---- channel mixing:  x1 + W4 @ GELU(W3 @ LN2(x1)), chunked over Cf ----
    u = _layernorm(x1, g2_ref[...], be2_ref[...])
    u_c = u.astype(w3t_ref.dtype)
    Cf = w3t_ref.shape[1]
    cm = None
    for c0 in range(0, Cf, cf_chunk):                       # static loop; MXU(k+1) overlaps GELU(k)
        h = jnp.dot(u_c, w3t_ref[:, c0:c0 + cf_chunk],
                    preferred_element_type=f32) + b3_ref[:, c0:c0 + cf_chunk]
        g = _gelu_exact(h, approx_recip)
        part = jnp.dot(g.astype(w4t_ref.dtype), w4t_ref[c0:c0 + cf_chunk, :],
                       preferred_element_type=f32)
        cm = part if cm is None else cm + part

    o_ref[0] = (x1 + cm + b4_ref[...]).astype(o_ref.dtype)


def _resident_spec(shape):
    """Constant-index BlockSpec: operand stays VMEM-resident across the whole grid.
    Buffered(1) disables double-buffering for it (its block index never changes)."""
    index_map = lambda b, r: (0, 0)              # all resident operands here are 2-D
    buffered = getattr(pl, "Buffered", None)
    if buffered is not None:
        try:
            return pl.BlockSpec(shape, index_map, pipeline_mode=buffered(1))
        except TypeError:                        # jax without pipeline_mode on BlockSpec
            pass
    return pl.BlockSpec(shape, index_map)


def _pick_row_tile(n):
    # Split the patch axis only when it is big enough: keeps both v7x TensorCores busy
    # at small batch and shrinks the (rows, Cf) intermediates.
    for t in (256, 128):
        if n > t and n % t == 0:
            return t
    return n


def _pick_cf_chunk(cf):
    for c in (512, 256, 128):
        if cf > c and cf % c == 0:
            return c
    return cf


def mixer_forward(x, params, compute_dtype=jnp.bfloat16, row_tile=None,
                  cf_chunk=None, approx_recip=None):
    """x: (B, H, W, C) with H == W == num_patches.  Matches Mixer.forward."""
    B, H, W, C = x.shape
    assert H == W, "Mixer expects a square patch grid (H == W == num_patches)"
    N = H * W
    Cf = params["w3"].shape[0]

    if approx_recip is None:                       # EUP approx recip only on the fast path
        approx_recip = compute_dtype != jnp.float32
    if row_tile is None:
        row_tile = _pick_row_tile(N)
    assert N % row_tile == 0
    if cf_chunk is None:
        cf_chunk = _pick_cf_chunk(Cf)
    assert Cf % cf_chunk == 0
    num_row_tiles = N // row_tile

    # Fold both spatial Linears (+ all permutes) into one operator on the flat patch axis.
    mk = jnp.kron(params["w1"], params["w2"]).astype(compute_dtype)              # (N, N)
    btok = (params["b1"][:, None] * jnp.sum(params["w2"], axis=1)[None, :]
            + params["b2"][None, :]).reshape(N, 1).astype(jnp.float32)           # (N, 1)

    x2d = x.reshape(B, N, C)                                  # free row-major reshape
    g1 = params["ln1_g"].reshape(1, C)
    be1 = params["ln1_b"].reshape(1, C)
    g2 = params["ln2_g"].reshape(1, C)
    be2 = params["ln2_b"].reshape(1, C)
    w3t = params["w3"].T.astype(compute_dtype)                # (C, Cf)
    b3 = params["b3"].reshape(1, Cf).astype(jnp.float32)
    w4t = params["w4"].T.astype(compute_dtype)                # (Cf, C)
    b4 = params["b4"].reshape(1, C).astype(jnp.float32)

    cd_bytes = jnp.dtype(compute_dtype).itemsize
    x_bytes = jnp.dtype(x.dtype).itemsize

    # Advisory cost + explicit VMEM budget (single-buffered weights, double-buffered x/o).
    flops = int(B * (2 * N * N * C + 4 * N * C * Cf))
    transcendentals = int(B * N * (2 * Cf + 2))
    weight_bytes = (N * N + 2 * C * Cf) * cd_bytes + (N + Cf + 6 * C) * 4
    bytes_accessed = int(2 * B * N * C * x_bytes + weight_bytes)
    cost = pl.CostEstimate(flops=flops, transcendentals=transcendentals,
                           bytes_accessed=bytes_accessed)

    act_vmem = 2 * N * C * x_bytes + 2 * row_tile * C * x_bytes
    interm_vmem = 4 * N * C * 4 + 4 * row_tile * max(cf_chunk, C) * 4
    vmem_limit = int(min(max(2 * (weight_bytes + act_vmem + interm_vmem),
                             32 * 1024 * 1024), 60 * 1024 * 1024))

    kernel = functools.partial(_mixer_kernel, cf_chunk=cf_chunk,
                               approx_recip=approx_recip)

    out = pl.pallas_call(
        kernel,
        out_shape=jax.ShapeDtypeStruct((B, N, C), x.dtype),
        grid=(B, num_row_tiles),
        in_specs=[
            # x streamed per batch element; block index ignores the row axis, so it is
            # only re-DMA'd when the batch index changes.
            pl.BlockSpec((1, N, C), lambda b, r: (b, 0, 0)),
            _resident_spec((1, C)), _resident_spec((1, C)),     # LN1 gamma / beta
            _resident_spec((N, N)), _resident_spec((N, 1)),     # token-mix operator + bias
            _resident_spec((1, C)), _resident_spec((1, C)),     # LN2 gamma / beta
            _resident_spec((C, Cf)), _resident_spec((1, Cf)),   # W3^T, b3
            _resident_spec((Cf, C)), _resident_spec((1, C)),    # W4^T, b4
        ],
        out_specs=pl.BlockSpec((1, row_tile, C), lambda b, r: (b, r, 0)),
        compiler_params=pltpu.CompilerParams(
            dimension_semantics=("parallel", "parallel"),
            vmem_limit_bytes=vmem_limit),
        cost_estimate=cost,
    )(x2d, g1, be1, mk, btok, g2, be2, w3t, b3, w4t, b4)

    return out.reshape(B, H, W, C)


def mixer_reference(x, params):
    """Pure-JAX mirror of the PyTorch module (op-by-op), for correctness checks."""
    def ln(v, g, b):
        mu = v.mean(-1, keepdims=True)
        var = ((v - mu) ** 2).mean(-1, keepdims=True)
        return (v - mu) / jnp.sqrt(var + _LN_EPS) * g + b

    # token mixing
    y = ln(x, params["ln1_g"], params["ln1_b"])
    y = jnp.transpose(y, (0, 3, 2, 1))                     # b h w c -> b c w h
    y = y @ params["w1"].T + params["b1"]                  # Linear over h
    y = jnp.transpose(y, (0, 1, 3, 2))                     # b c w h -> b c h w
    y = y @ params["w2"].T + params["b2"]                  # Linear over w
    y = jnp.transpose(y, (0, 2, 3, 1))                     # b c h w -> b h w c
    x = x + y
    # channel mixing
    u = ln(x, params["ln2_g"], params["ln2_b"])
    h = jax.nn.gelu(u @ params["w3"].T + params["b3"], approximate=False)
    x = x + h @ params["w4"].T + params["b4"]
    return x


def init_params(key, num_patches, num_channels, f_hidden):
    """PyTorch-default-style init (Linear: U(+-1/sqrt(fan_in)); LN slightly perturbed)."""
    S, C = num_patches, num_channels
    Cf = C * f_hidden
    ks = jax.random.split(key, 12)

    def linear_init(kw, kb, out_dim, in_dim):
        bound = 1.0 / math.sqrt(in_dim)
        w = jax.random.uniform(kw, (out_dim, in_dim), minval=-bound, maxval=bound,
                               dtype=jnp.float32)
        b = jax.random.uniform(kb, (out_dim,), minval=-bound, maxval=bound,
                               dtype=jnp.float32)
        return w, b

    w1, b1 = linear_init(ks[0], ks[1], S, S)
    w2, b2 = linear_init(ks[2], ks[3], S, S)
    w3, b3 = linear_init(ks[4], ks[5], Cf, C)
    w4, b4 = linear_init(ks[6], ks[7], C, Cf)
    ln1_g = 1.0 + 0.1 * jax.random.normal(ks[8], (C,), dtype=jnp.float32)
    ln1_b = 0.1 * jax.random.normal(ks[9], (C,), dtype=jnp.float32)
    ln2_g = 1.0 + 0.1 * jax.random.normal(ks[10], (C,), dtype=jnp.float32)
    ln2_b = 0.1 * jax.random.normal(ks[11], (C,), dtype=jnp.float32)
    return dict(ln1_g=ln1_g, ln1_b=ln1_b, w1=w1, b1=b1, w2=w2, b2=b2,
                ln2_g=ln2_g, ln2_b=ln2_b, w3=w3, b3=b3, w4=w4, b4=b4)


if __name__ == "__main__":
    key = jax.random.PRNGKey(0)
    kx, kp = jax.random.split(key)

    B, S, C, f_hidden = 2, 8, 32, 2          # batch, num_patches (H=W), num_channels, f_hidden
    x = jax.random.normal(kx, (B, S, S, C), dtype=jnp.float32)
    params = init_params(kp, S, C, f_hidden)

    ref = mixer_reference(x, params)

    # f32 operand path (exact divide in GELU) — tight check against the reference.
    fwd_f32 = jax.jit(lambda a, p: mixer_forward(a, p, compute_dtype=jnp.float32))
    out = jax.block_until_ready(fwd_f32(x, params))
    assert out.shape == (B, S, S, C)
    assert jnp.allclose(out, ref, atol=1e-4, rtol=1e-4), \
        float(jnp.max(jnp.abs(out - ref)))

    # Default fast path: bf16 matmul operands (f32 accumulation) + EUP approx reciprocal
    # in the GELU.  Looser tolerance by construction.
    fwd_fast = jax.jit(mixer_forward)
    out_fast = jax.block_until_ready(fwd_fast(x, params))
    assert out_fast.shape == (B, S, S, C)
    assert jnp.allclose(out_fast, ref, atol=1e-1, rtol=5e-2), \
        float(jnp.max(jnp.abs(out_fast - ref)))

    print("KERNEL_OK")
</pallas_src>

<mosaic_0001>
module attributes {stable_mosaic.version = 11 : i64} {
  func.func @_mixer_kernel(%arg0: i32, %arg1: i32, %arg2: memref<1x64x32xf32, #tpu.memory_space<vmem>>, %arg3: memref<1x32xf32, #tpu.memory_space<vmem>>, %arg4: memref<1x32xf32, #tpu.memory_space<vmem>>, %arg5: memref<64x64xf32, #tpu.memory_space<vmem>>, %arg6: memref<64x1xf32, #tpu.memory_space<vmem>>, %arg7: memref<1x32xf32, #tpu.memory_space<vmem>>, %arg8: memref<1x32xf32, #tpu.memory_space<vmem>>, %arg9: memref<32x64xf32, #tpu.memory_space<vmem>>, %arg10: memref<1x64xf32, #tpu.memory_space<vmem>>, %arg11: memref<64x32xf32, #tpu.memory_space<vmem>>, %arg12: memref<1x32xf32, #tpu.memory_space<vmem>>, %arg13: memref<1x64x32xf32, #tpu.memory_space<vmem>>) attributes {dimension_semantics = [#tpu.dimension_semantics<parallel>, #tpu.dimension_semantics<parallel>], iteration_bounds = array<i64: 2, 1>, scalar_prefetch = 0 : i64, scratch_operands = 0 : i64, tpu.core_type = #tpu.core_type<tc>, window_params = [{transform_indices = @transform_0, window_bounds = array<i64: 1, 64, 32>}, {pipeline_mode = #tpu.pipeline_mode<synchronous>, transform_indices = @transform_1, window_bounds = array<i64: 1, 32>}, {pipeline_mode = #tpu.pipeline_mode<synchronous>, transform_indices = @transform_2, window_bounds = array<i64: 1, 32>}, {pipeline_mode = #tpu.pipeline_mode<synchronous>, transform_indices = @transform_3, window_bounds = array<i64: 64, 64>}, {pipeline_mode = #tpu.pipeline_mode<synchronous>, transform_indices = @transform_4, window_bounds = array<i64: 64, 1>}, {pipeline_mode = #tpu.pipeline_mode<synchronous>, transform_indices = @transform_5, window_bounds = array<i64: 1, 32>}, {pipeline_mode = #tpu.pipeline_mode<synchronous>, transform_indices = @transform_6, window_bounds = array<i64: 1, 32>}, {pipeline_mode = #tpu.pipeline_mode<synchronous>, transform_indices = @transform_7, window_bounds = array<i64: 32, 64>}, {pipeline_mode = #tpu.pipeline_mode<synchronous>, transform_indices = @transform_8, window_bounds = array<i64: 1, 64>}, {pipeline_mode = #tpu.pipeline_mode<synchronous>, transform_indices = @transform_9, window_bounds = array<i64: 64, 32>}, {pipeline_mode = #tpu.pipeline_mode<synchronous>, transform_indices = @transform_10, window_bounds = array<i64: 1, 32>}, {transform_indices = @transform_11, window_bounds = array<i64: 1, 64, 32>}]} {
    %c64_i32 = arith.constant 64 : i32
    %0 = arith.muli %arg1, %c64_i32 : i32
    %1 = tpu.assume_multiple %0, 64 : i32
    %c0 = arith.constant 0 : index
    %c0_0 = arith.constant 0 : index
    %c0_1 = arith.constant 0 : index
    %2 = vector.load %arg2[%c0, %c0_0, %c0_1] : memref<1x64x32xf32, #tpu.memory_space<vmem>>, vector<1x64x32xf32>
    %3 = vector.shape_cast %2 : vector<1x64x32xf32> to vector<64x32xf32>
    %c0_2 = arith.constant 0 : index
    %c0_3 = arith.constant 0 : index
    %4 = vector.load %arg3[%c0_2, %c0_3] : memref<1x32xf32, #tpu.memory_space<vmem>>, vector<1x32xf32>
    %c0_4 = arith.constant 0 : index
    %c0_5 = arith.constant 0 : index
    %5 = vector.load %arg4[%c0_4, %c0_5] : memref<1x32xf32, #tpu.memory_space<vmem>>, vector<1x32xf32>
    %cst = arith.constant dense<0.000000e+00> : vector<64xf32>
    %6 = vector.multi_reduction <add>, %3, %cst [1] : vector<64x32xf32> to vector<64xf32>
    %7 = vector.shape_cast %6 : vector<64xf32> to vector<64x1xf32>
    %cst_6 = arith.constant 3.200000e+01 : f32
    %8 = vector.broadcast %cst_6 : f32 to vector<64x1xf32>
    %9 = arith.divf %7, %8 : vector<64x1xf32>
    %10 = vector.broadcast %9 : vector<64x1xf32> to vector<64x32xf32>
    %11 = arith.subf %3, %10 : vector<64x32xf32>
    %12 = arith.mulf %11, %11 : vector<64x32xf32>
    %cst_7 = arith.constant dense<0.000000e+00> : vector<64xf32>
    %13 = vector.multi_reduction <add>, %12, %cst_7 [1] : vector<64x32xf32> to vector<64xf32>
    %14 = vector.shape_cast %13 : vector<64xf32> to vector<64x1xf32>
    %cst_8 = arith.constant 3.200000e+01 : f32
    %15 = vector.broadcast %cst_8 : f32 to vector<64x1xf32>
    %16 = arith.divf %14, %15 : vector<64x1xf32>
    %cst_9 = arith.constant 9.99999974E-6 : f32
    %17 = vector.broadcast %cst_9 : f32 to vector<64x1xf32>
    %18 = arith.addf %16, %17 : vector<64x1xf32>
    %19 = math.rsqrt %18 : vector<64x1xf32>
    %20 = vector.broadcast %19 : vector<64x1xf32> to vector<64x32xf32>
    %21 = arith.mulf %11, %20 : vector<64x32xf32>
    %22 = vector.broadcast %4 : vector<1x32xf32> to vector<64x32xf32>
    %23 = arith.mulf %21, %22 : vector<64x32xf32>
    %24 = vector.broadcast %5 : vector<1x32xf32> to vector<64x32xf32>
    %25 = arith.addf %23, %24 : vector<64x32xf32>
    %26 = arith.index_cast %1 : i32 to index
    %c0_10 = arith.constant 0 : index
    %27 = vector.load %arg5[%26, %c0_10] : memref<64x64xf32, #tpu.memory_space<vmem>>, vector<64x64xf32>
    %cst_11 = arith.constant dense<0.000000e+00> : vector<64x32xf32>
    %28 = tpu.matmul %27, %25, %cst_11 {dimension_numbers = #tpu.dot_dimension_numbers<[1], [0], [0], [1], [0, 0, 1, 1], [], []>} : vector<64x64xf32>, vector<64x32xf32>, vector<64x32xf32> -> vector<64x32xf32>
    %c0_12 = arith.constant 0 : index
    %29 = arith.index_cast %1 : i32 to index
    %c0_13 = arith.constant 0 : index
    %30 = vector.load %arg2[%c0_12, %29, %c0_13] : memref<1x64x32xf32, #tpu.memory_space<vmem>>, vector<1x64x32xf32>
    %31 = vector.shape_cast %30 : vector<1x64x32xf32> to vector<64x32xf32>
    %32 = arith.addf %31, %28 : vector<64x32xf32>
    %33 = arith.index_cast %1 : i32 to index
    %c0_14 = arith.constant 0 : index
    %34 = vector.load %arg6[%33, %c0_14] : memref<64x1xf32, #tpu.memory_space<vmem>>, vector<64x1xf32>
    %35 = vector.broadcast %34 : vector<64x1xf32> to vector<64x32xf32>
    %36 = arith.addf %32, %35 : vector<64x32xf32>
    %c0_15 = arith.constant 0 : index
    %c0_16 = arith.constant 0 : index
    %37 = vector.load %arg7[%c0_15, %c0_16] : memref<1x32xf32, #tpu.memory_space<vmem>>, vector<1x32xf32>
    %c0_17 = arith.constant 0 : index
    %c0_18 = arith.constant 0 : index
    %38 = vector.load %arg8[%c0_17, %c0_18] : memref<1x32xf32, #tpu.memory_space<vmem>>, vector<1x32xf32>
    %cst_19 = arith.constant dense<0.000000e+00> : vector<64xf32>
    %39 = vector.multi_reduction <add>, %36, %cst_19 [1] : vector<64x32xf32> to vector<64xf32>
    %40 = vector.shape_cast %39 : vector<64xf32> to vector<64x1xf32>
    %cst_20 = arith.constant 3.200000e+01 : f32
    %41 = vector.broadcast %cst_20 : f32 to vector<64x1xf32>
    %42 = arith.divf %40, %41 : vector<64x1xf32>
    %43 = vector.broadcast %42 : vector<64x1xf32> to vector<64x32xf32>
    %44 = arith.subf %36, %43 : vector<64x32xf32>
    %45 = arith.mulf %44, %44 : vector<64x32xf32>
    %cst_21 = arith.constant dense<0.000000e+00> : vector<64xf32>
    %46 = vector.multi_reduction <add>, %45, %cst_21 [1] : vector<64x32xf32> to vector<64xf32>
    %47 = vector.shape_cast %46 : vector<64xf32> to vector<64x1xf32>
    %cst_22 = arith.constant 3.200000e+01 : f32
    %48 = vector.broadcast %cst_22 : f32 to vector<64x1xf32>
    %49 = arith.divf %47, %48 : vector<64x1xf32>
    %cst_23 = arith.constant 9.99999974E-6 : f32
    %50 = vector.broadcast %cst_23 : f32 to vector<64x1xf32>
    %51 = arith.addf %49, %50 : vector<64x1xf32>
    %52 = math.rsqrt %51 : vector<64x1xf32>
    %53 = vector.broadcast %52 : vector<64x1xf32> to vector<64x32xf32>
    %54 = arith.mulf %44, %53 : vector<64x32xf32>
    %55 = vector.broadcast %37 : vector<1x32xf32> to vector<64x32xf32>
    %56 = arith.mulf %54, %55 : vector<64x32xf32>
    %57 = vector.broadcast %38 : vector<1x32xf32> to vector<64x32xf32>
    %58 = arith.addf %56, %57 : vector<64x32xf32>
    %c0_24 = arith.constant 0 : index
    %c0_25 = arith.constant 0 : index
    %59 = vector.load %arg9[%c0_24, %c0_25] : memref<32x64xf32, #tpu.memory_space<vmem>>, vector<32x64xf32>
    %cst_26 = arith.constant dense<0.000000e+00> : vector<64x64xf32>
    %60 = tpu.matmul %58, %59, %cst_26 {dimension_numbers = #tpu.dot_dimension_numbers<[1], [0], [0], [1], [0, 0, 1, 1], [], []>} : vector<64x32xf32>, vector<32x64xf32>, vector<64x64xf32> -> vector<64x64xf32>
    %c0_27 = arith.constant 0 : index
    %c0_28 = arith.constant 0 : index
    %61 = vector.load %arg10[%c0_27, %c0_28] : memref<1x64xf32, #tpu.memory_space<vmem>>, vector<1x64xf32>
    %62 = vector.broadcast %61 : vector<1x64xf32> to vector<64x64xf32>
    %63 = arith.addf %60, %62 : vector<64x64xf32>
    %64 = math.absf %63 : vector<64x64xf32>
    %cst_29 = arith.constant 0.707106769 : f32
    %65 = vector.broadcast %cst_29 : f32 to vector<64x64xf32>
    %66 = arith.mulf %64, %65 : vector<64x64xf32>
    %cst_30 = arith.constant 0.327591091 : f32
    %67 = vector.broadcast %cst_30 : f32 to vector<64x64xf32>
    %68 = arith.mulf %67, %66 : vector<64x64xf32>
    %cst_31 = arith.constant 1.000000e+00 : f32
    %69 = vector.broadcast %cst_31 : f32 to vector<64x64xf32>
    %70 = arith.addf %69, %68 : vector<64x64xf32>
    %71 = tpu.reciprocal %70 : vector<64x64xf32> -> vector<64x64xf32>
    %cst_32 = arith.constant 1.06140542 : f32
    %72 = vector.broadcast %cst_32 : f32 to vector<64x64xf32>
    %73 = arith.mulf %72, %71 : vector<64x64xf32>
    %cst_33 = arith.constant -1.45315206 : f32
    %74 = vector.broadcast %cst_33 : f32 to vector<64x64xf32>
    %75 = arith.addf %73, %74 : vector<64x64xf32>
    %76 = arith.mulf %75, %71 : vector<64x64xf32>
    %cst_34 = arith.constant 1.42141378 : f32
    %77 = vector.broadcast %cst_34 : f32 to vector<64x64xf32>
    %78 = arith.addf %76, %77 : vector<64x64xf32>
    %79 = arith.mulf %78, %71 : vector<64x64xf32>
    %cst_35 = arith.constant -0.284496725 : f32
    %80 = vector.broadcast %cst_35 : f32 to vector<64x64xf32>
    %81 = arith.addf %79, %80 : vector<64x64xf32>
    %82 = arith.mulf %81, %71 : vector<64x64xf32>
    %cst_36 = arith.constant 0.254829586 : f32
    %83 = vector.broadcast %cst_36 : f32 to vector<64x64xf32>
    %84 = arith.addf %82, %83 : vector<64x64xf32>
    %85 = arith.mulf %84, %71 : vector<64x64xf32>
    %cst_37 = arith.constant 0.000000e+00 : f32
    %86 = vector.broadcast %cst_37 : f32 to vector<64x64xf32>
    %87 = arith.subf %86, %66 : vector<64x64xf32>
    %88 = arith.mulf %87, %66 : vector<64x64xf32>
    %89 = math.exp %88 : vector<64x64xf32>
    %90 = arith.mulf %85, %89 : vector<64x64xf32>
    %91 = arith.addf %63, %64 : vector<64x64xf32>
    %cst_38 = arith.constant 5.000000e-01 : f32
    %92 = vector.broadcast %cst_38 : f32 to vector<64x64xf32>
    %93 = arith.mulf %92, %91 : vector<64x64xf32>
    %cst_39 = arith.constant 5.000000e-01 : f32
    %94 = vector.broadcast %cst_39 : f32 to vector<64x64xf32>
    %95 = arith.mulf %94, %64 : vector<64x64xf32>
    %96 = arith.mulf %95, %90 : vector<64x64xf32>
    %97 = arith.subf %93, %96 : vector<64x64xf32>
    %c0_40 = arith.constant 0 : index
    %c0_41 = arith.constant 0 : index
    %98 = vector.load %arg11[%c0_40, %c0_41] : memref<64x32xf32, #tpu.memory_space<vmem>>, vector<64x32xf32>
    %cst_42 = arith.constant dense<0.000000e+00> : vector<64x32xf32>
    %99 = tpu.matmul %97, %98, %cst_42 {dimension_numbers = #tpu.dot_dimension_numbers<[1], [0], [0], [1], [0, 0, 1, 1], [], []>} : vector<64x64xf32>, vector<64x32xf32>, vector<64x32xf32> -> vector<64x32xf32>
    %100 = arith.addf %36, %99 : vector<64x32xf32>
    %c0_43 = arith.constant 0 : index
    %c0_44 = arith.constant 0 : index
    %101 = vector.load %arg12[%c0_43, %c0_44] : memref<1x32xf32, #tpu.memory_space<vmem>>, vector<1x32xf32>
    %102 = vector.broadcast %101 : vector<1x32xf32> to vector<64x32xf32>
    %103 = arith.addf %100, %102 : vector<64x32xf32>
    %c0_45 = arith.constant 0 : index
    %c0_46 = arith.constant 0 : index
    %c0_47 = arith.constant 0 : index
    %104 = vector.load %arg13[%c0_45, %c0_46, %c0_47] : memref<1x64x32xf32, #tpu.memory_space<vmem>>, vector<1x64x32xf32>
    %105 = vector.shape_cast %104 : vector<1x64x32xf32> to vector<64x32xf32>
    %106 = vector.shape_cast %103 : vector<64x32xf32> to vector<1x64x32xf32>
    tpu.vector_store %arg13[%c0_45, %c0_46, %c0_47], %106 {strides = array<i32>} : memref<1x64x32xf32, #tpu.memory_space<vmem>>, vector<1x64x32xf32>,
    return
  }
  func.func @transform_0(%arg0: i32, %arg1: i32) -> (i32, i32, i32) {
    %c0_i32 = arith.constant 0 : i32
    %c0_i32_0 = arith.constant 0 : i32
    %c0_i32_1 = arith.constant 0 : i32
    return %arg0, %c0_i32, %c0_i32_0 : i32, i32, i32
  }
  func.func @transform_1(%arg0: i32, %arg1: i32) -> (i32, i32) {
    %c0_i32 = arith.constant 0 : i32
    %c0_i32_0 = arith.constant 0 : i32
    %c0_i32_1 = arith.constant 0 : i32
    return %c0_i32, %c0_i32_0 : i32, i32
  }
  func.func @transform_2(%arg0: i32, %arg1: i32) -> (i32, i32) {
    %c0_i32 = arith.constant 0 : i32
    %c0_i32_0 = arith.constant 0 : i32
    %c0_i32_1 = arith.constant 0 : i32
    return %c0_i32, %c0_i32_0 : i32, i32
  }
  func.func @transform_3(%arg0: i32, %arg1: i32) -> (i32, i32) {
    %c0_i32 = arith.constant 0 : i32
    %c0_i32_0 = arith.constant 0 : i32
    %c0_i32_1 = arith.constant 0 : i32
    return %c0_i32, %c0_i32_0 : i32, i32
  }
  func.func @transform_4(%arg0: i32, %arg1: i32) -> (i32, i32) {
    %c0_i32 = arith.constant 0 : i32
    %c0_i32_0 = arith.constant 0 : i32
    %c0_i32_1 = arith.constant 0 : i32
    return %c0_i32, %c0_i32_0 : i32, i32
  }
  func.func @transform_5(%arg0: i32, %arg1: i32) -> (i32, i32) {
    %c0_i32 = arith.constant 0 : i32
    %c0_i32_0 = arith.constant 0 : i32
    %c0_i32_1 = arith.constant 0 : i32
    return %c0_i32, %c0_i32_0 : i32, i32
  }
  func.func @transform_6(%arg0: i32, %arg1: i32) -> (i32, i32) {
    %c0_i32 = arith.constant 0 : i32
    %c0_i32_0 = arith.constant 0 : i32
    %c0_i32_1 = arith.constant 0 : i32
    return %c0_i32, %c0_i32_0 : i32, i32
  }
  func.func @transform_7(%arg0: i32, %arg1: i32) -> (i32, i32) {
    %c0_i32 = arith.constant 0 : i32
    %c0_i32_0 = arith.constant 0 : i32
    %c0_i32_1 = arith.constant 0 : i32
    return %c0_i32, %c0_i32_0 : i32, i32
  }
  func.func @transform_8(%arg0: i32, %arg1: i32) -> (i32, i32) {
    %c0_i32 = arith.constant 0 : i32
    %c0_i32_0 = arith.constant 0 : i32
    %c0_i32_1 = arith.constant 0 : i32
    return %c0_i32, %c0_i32_0 : i32, i32
  }
  func.func @transform_9(%arg0: i32, %arg1: i32) -> (i32, i32) {
    %c0_i32 = arith.constant 0 : i32
    %c0_i32_0 = arith.constant 0 : i32
    %c0_i32_1 = arith.constant 0 : i32
    return %c0_i32, %c0_i32_0 : i32, i32
  }
  func.func @transform_10(%arg0: i32, %arg1: i32) -> (i32, i32) {
    %c0_i32 = arith.constant 0 : i32
    %c0_i32_0 = arith.constant 0 : i32
    %c0_i32_1 = arith.constant 0 : i32
    return %c0_i32, %c0_i32_0 : i32, i32
  }
  func.func @transform_11(%arg0: i32, %arg1: i32) -> (i32, i32, i32) {
    %c0_i32 = arith.constant 0 : i32
    %c0_i32_0 = arith.constant 0 : i32
    return %arg0, %arg1, %c0_i32 : i32, i32, i32
  }
}

</mosaic_0001>

<bundles_post_ra>
// kernel: _lambda_.1
= control target key start
LH: loop header
LB: loop body
LE: loop exit
PB: predicated region body
PF: predicated region fallthrough
CT: control target
= control target key end

     0   :  { %s2533_s0 = inlined_call_operand.vmem [shape: f32[2,64,32], index: 0, kind: input, shape index: {}]   ;;  %s2534_s1 = inlined_call_operand.vmem [shape: f32[1,32], index: 1, kind: input, shape index: {}]   ;;  %s2535_s2 = inlined_call_operand.vmem [shape: f32[1,32], index: 2, kind: input, shape index: {}]   ;;  %s2536_s3 = inlined_call_operand.vmem [shape: f32[64,64], index: 3, kind: input, shape index: {}]   ;;  %s2537_s4 = inlined_call_operand.vmem [shape: f32[64,1], index: 4, kind: input, shape index: {}]   ;;  %s2538_s5 = inlined_call_operand.vmem [shape: f32[1,32], index: 5, kind: input, shape index: {}]   ;;  %s2539_s6 = inlined_call_operand.vmem [shape: f32[1,32], index: 6, kind: input, shape index: {}]   ;;  %s2540_s7 = inlined_call_operand.vmem [shape: f32[32,64], index: 7, kind: input, shape index: {}]   ;;  %s2541_s8 = inlined_call_operand.vmem [shape: f32[1,64], index: 8, kind: input, shape index: {}]   ;;  %s2542_s9 = inlined_call_operand.vmem [shape: f32[64,32], index: 9, kind: input, shape index: {}]   ;;  %s2543_s10 = inlined_call_operand.vmem [shape: f32[1,32], index: 10, kind: input, shape index: {}]   ;;  %s2544_s11 = inlined_call_operand.hbm [shape: f32[2,64,32], index: 11, kind: output, shape index: {}]  }
   0x1   :  { %2545 = sst [smem:[#allocation5_spill]] %s2533_s0 }
   0x2   :  { %2546 = sst [smem:[#allocation6_spill]] %s2534_s1 }
   0x3   :  { %16 = vsyncpa [#allocation3], 0 }
   0x4   :  { %18 = vsyncpa [#allocation3 + $0x1], 0  ;;  %s1934_s17 = smov 0   ;;  %s1936_s18 = smov 0  }
   0x5   :  { %s1938_s19 = smov 0   ;;  %s1940_s20 = smov 0  }
   0x6   :  { %s1942_s21 = smov 0   ;;  %s1944_s22 = smov 0  }
   0x7 LB: > { %s1487_s23 = sadd.s32 4294967295, %s1868_s22   ;;  %s1488_s24 = sadd.s32 4294967294, %s1868_s22   ;;  %s1868_s22 = sphi %s1944_s22, %s24_s22   ;;  %s1864_s21 = sphi %s1942_s21, %s2555_s21   ;;  %s1860_s20 = sphi %s1940_s20, %s2554_s20   ;;  %s1856_s19 = sphi %s1938_s19, %s2553_s19   ;;  %s1852_s18 = sphi %s1936_s18, %s2552_s18   ;;  %s1848_s17 = sphi %s1934_s17, %s2551_s17  }
   0x8   : > { %s36_s25 = sadd.s32 1, %s1864_s21  ;;  %s281_s26 = sadd.s32 1, %s1856_s19 }
   0x9   : > { %p38_p0 = scmp.ge.s32.totalorder %s36_s25, 2  ;;  %p291_p1 = scmp.ne.s32.totalorder %s1856_s19, %s1852_s18 }
   0xa   : > { %p292_p2 = scmp.eq.s32.totalorder %s1487_s23, 1  ;;  %p297_p3 = scmp.ne.s32.totalorder %s1852_s18, %s1848_s17 }
   0xb   : > { %s2557_s25 = smov (%p38_p0, %s36_s25), 0  ;;  %p298_p5 = scmp.eq.s32.totalorder %s1488_s24, 1 }
   0xc   : > { %p1974_p4 = por %p292_p2, %p291_p1  ;;  %s276_s28 = ssub.s32 %s1864_s21, %s2557_s25 }
   0xd   : > { %p1491_p6 = scmp.ge.s32.totalorder %s1868_s22, 1  ;;  %p279_p7 = scmp.eq.s32.totalorder %s276_s28, 0 }
   0xe   : > { %p1981_p8 = por %p298_p5, %p297_p3  ;;  %p354_p9 = scmp.lt.s32.totalorder %s1868_s22, 3 }
   0xf   : > { %s1987_s30 = scalar_select %p279_p7, %s1856_s19, %s281_s26  }
  0x10   : > { %p355_p10 = pnand %p1491_p6, %p354_p9 }
  0x11   : > { %p394_p11 = scmp.lt.s32.totalorder (!%p355_p10), %s1860_s20, 1  ;;  %s2549_s0 = sld [smem:[#allocation5_spill]] (!%p355_p10) }
  0x12   : > { %358 = sbr.rel (%p355_p10) target bundleno = 1339 (0x53b), region = 64  ;;  %s2550_s1 = sld [smem:[#allocation6_spill]] (!%p355_p10) }
  0x13   : > { %s391_s14 = sand.u32 (!%p355_p10), 1, %s1852_s18   ;;  %s1531_s24 = sshll.u32 (!%p355_p10), %s1860_s20, 10 }
  0x14   : > { %s1492_s15 = sshll.u32 (!%p355_p10), %s391_s14, 6 }
  0x15   : > { %s2453_s23 = scalar_lea.vmem (!%p355_p10), [#allocation2], %s1492_s15 }
  0x16   : > { %s1408_s26 = sshll.u32 (!%p355_p10), %s2453_s23, 4  ;;  %s2480_s26 = int_to_ptr.vmem [resolvable:$true] %s1408_s26 }
  0x17   : > { %s395_s12 = scalar_select %p394_p11, %s1860_s20, 1  ;;  %vm411_vm0 = vcmask 261120   ;;  %v546_v56 = vld [vmem:[%s2536_s3] sm:$0xff]  ;;  %vm554_vm1 = vcmask 523264   ;;  %v703_v57 = vld [vmem:[%s2537_s4 + $0x8] sm:$0xff]  ;;  %v1870_v58 = vmov 0  }
  0x18   : > { %1592 = vmatprep.mubr.msk.f32.mxu0 %vm554_vm1, %v546_v56  ;;  %1727 = vset.pattern.permute.xlu1 %v1870_v58  ;;  %v702_v59 = vld [vmem:[%s2537_s4] sm:$0xff]  ;;  %v704_v60 = vld [vmem:[%s2537_s4 + $0x10] sm:$0xff]  ;;  %v705_v61 = vld [vmem:[%s2537_s4 + $0x18] sm:$0xff]  ;;  %s2488_s20 = scalar_lea.sflag [#allocation3], %s391_s14  ;;  %s1792_s15 = scalar_lea.vmem %s2480_s26, 1024 }
  0x19   : > { %s1530_s13 = sshll.u32 %s395_s12, 6  ;;  %1726 = vset.pattern.permute.xlu0 %v1870_v58  ;;  %v706_v62 = vld [vmem:[%s2537_s4 + $0x20] sm:$0xff]  ;;  %v707_v63 = vld [vmem:[%s2537_s4 + $0x28] sm:$0xff]  ;;  %p1793_p12 = scmp.ne.s32.totalorder %s2480_s26, %s1792_s15 }
  0x1a   : > { %s398_s16 = scalar_lea.vmem %s2549_s0, %s1530_s13  ;;  %s2478_s13 = scalar_lea.hbm %s2544_s11, %s1531_s24 }
  0x1b   : > { %v1994_v0 = vld [vmem:[%s398_s16 + $0x38] sm:$0xff]  ;;  %v1996_v1 = vld [vmem:[%s398_s16 + $0x30] sm:$0xff]  ;;  %v1998_v2 = vld [vmem:[%s398_s16 + $0x28] sm:$0xff]  ;;  %p1794_p13 = pnand %p1793_p12, %p1974_p4  ;;  %s1871_s0 = smov [#allocation2]  }
  0x1c   : > { %v433_v3 = vsel %vm411_vm0, %v1994_v0, 0.0  ;;  %v427_v4 = vsel %vm411_vm0, %v1998_v2, 0.0  ;;  %v2004_v5 = vld [vmem:[%s398_s16 + $0x20] sm:$0xff]  ;;  %v430_v6 = vsel %vm411_vm0, %v1996_v1, 0.0  ;;  %v2010_v8 = vld [vmem:[%s398_s16 + $0x18] sm:$0xff]  ;;  %v2012_v9 = vld [vmem:[%s398_s16 + $0x10] sm:$0xff] }
  0x1d   : > { %434 = vadd.xlane.f32.xlu0 %v433_v3  ;;  %428 = vadd.xlane.f32.xlu1 %v427_v4  ;;  %v424_v7 = vsel %vm411_vm0, %v2004_v5, 0.0  ;;  %v421_v10 = vsel %vm411_vm0, %v2010_v8, 0.0  ;;  %v418_v11 = vsel %vm411_vm0, %v2012_v9, 0.0  ;;  %v2018_v12 = vld [vmem:[%s398_s16 + $0x8] sm:$0xff]  ;;  %v2020_v13 = vld [vmem:[%s398_s16] sm:$0xff]  ;;  %v708_v3 = vld [vmem:[%s2537_s4 + $0x30] sm:$0xff]  ;;  %p1795_p0 = pneg %p1794_p13 }
  0x1e   : > { %v415_v14 = vsel %vm411_vm0, %v2018_v12, 0.0  ;;  %v412_v15 = vsel %vm411_vm0, %v2020_v13, 0.0  ;;  %v709_v4 = vld [vmem:[%s2537_s4 + $0x38] sm:$0xff]  ;;  %s1796_s16 = sshll.u32 %s1871_s0, 4  ;;  %s1797_s16 = int_to_ptr.vmem [resolvable:$false] %s1796_s16 }
  0x1f   : > { %s1798_s24 = scalar_lea.vmem %s1797_s16, 2048  ;;  %p1799_p1 = scmp.lt.s32.totalorder %s2480_s26, %s1797_s16 }
  0x20   : > { %p1800_p2 = scmp.lt.s32.totalorder %s1798_s24, %s1792_s15 }
  0x21   : > { %431 = vadd.xlane.f32.xlu0 %v430_v6  ;;  %425 = vadd.xlane.f32.xlu1 %v424_v7 }
  0x22   : > { %p1801_p3 = por %p1800_p2, %p1799_p1 }
  0x24   : > { %p1802_p5 = pnand %p1801_p3, %p1795_p0 }
  0x25   : > { %422 = vadd.xlane.f32.xlu0 %v421_v10  ;;  %419 = vadd.xlane.f32.xlu1 %v418_v11 }
  0x29   : > { %416 = vadd.xlane.f32.xlu0 %v415_v14  ;;  %413 = vadd.xlane.f32.xlu1 %v412_v15 }
  0xa6   : > { %v435_v16 = vpop.xlane.xlu0 %434  ;;  %v429_v17 = vpop.xlane.xlu1 %428 }
  0xa7   : > { %v444_v18 = vmul.f32 0.03125, %v435_v16  ;;  %v442_v19 = vmul.f32 0.03125, %v429_v17 }
  0xa9   : > { %v2027_v20 = vsub.f32 %v1994_v0, %v444_v18  ;;  %v2030_v21 = vsub.f32 %v1998_v2, %v442_v19 }
  0xaa   : > { %v432_v22 = vpop.xlane.xlu0 %431  ;;  %v426_v23 = vpop.xlane.xlu1 %425 }
  0xab   : > { %v443_v24 = vmul.f32 0.03125, %v432_v22  ;;  %v441_v25 = vmul.f32 0.03125, %v426_v23  ;;  %v460_v26 = vmul.f32 %v2027_v20, %v2027_v20  ;;  %v458_v27 = vmul.f32 %v2030_v21, %v2030_v21 }
  0xad   : > { %v2037_v28 = vsub.f32 %v1996_v1, %v443_v24  ;;  %v2040_v29 = vsub.f32 %v2004_v5, %v441_v25  ;;  %v482_v30 = vsel %vm411_vm0, %v460_v26, 0.0  ;;  %v476_v33 = vsel %vm411_vm0, %v458_v27, 0.0 }
  0xae   : > { %v423_v31 = vpop.xlane.xlu0 %422  ;;  %483 = vadd.xlane.f32.xlu0 %v482_v30  ;;  %v420_v32 = vpop.xlane.xlu1 %419 }
  0xaf   : > { %v440_v34 = vmul.f32 0.03125, %v423_v31  ;;  %v439_v35 = vmul.f32 0.03125, %v420_v32  ;;  %v459_v36 = vmul.f32 %v2037_v28, %v2037_v28  ;;  %v457_v37 = vmul.f32 %v2040_v29, %v2040_v29 }
  0xb1   : > { %v2049_v38 = vsub.f32 %v2010_v8, %v440_v34  ;;  %v2052_v39 = vsub.f32 %v2012_v9, %v439_v35  ;;  %v479_v40 = vsel %vm411_vm0, %v459_v36, 0.0  ;;  %v473_v42 = vsel %vm411_vm0, %v457_v37, 0.0 }
  0xb2   : > { %477 = vadd.xlane.f32.xlu0 %v476_v33  ;;  %v417_v41 = vpop.xlane.xlu0 %416  ;;  %480 = vadd.xlane.f32.xlu1 %v479_v40  ;;  %v414_v43 = vpop.xlane.xlu1 %413  ;;  %v1495_v40 = vld [vmem:[%s2550_s1] ss:$0 sm:$0xff] }
  0xb3   : > { %v438_v44 = vmul.f32 0.03125, %v417_v41  ;;  %v456_v45 = vmul.f32 %v2049_v38, %v2049_v38  ;;  %v437_v46 = vmul.f32 0.03125, %v414_v43  ;;  %v455_v47 = vmul.f32 %v2052_v39, %v2052_v39  ;;  %v1496_v43 = vld [vmem:[%s2535_s2] ss:$0 sm:$0xff] }
  0xb5   : > { %v2061_v48 = vsub.f32 %v2018_v12, %v438_v44  ;;  %v470_v49 = vsel %vm411_vm0, %v456_v45, 0.0  ;;  %v2065_v50 = vsub.f32 %v2020_v13, %v437_v46  ;;  %v467_v52 = vsel %vm411_vm0, %v455_v47, 0.0 }
  0xb6   : > { %471 = vadd.xlane.f32.xlu0 %v470_v49  ;;  %474 = vadd.xlane.f32.xlu1 %v473_v42 }
  0xb7   : > { %v454_v51 = vmul.f32 %v2061_v48, %v2061_v48  ;;  %v453_v53 = vmul.f32 %v2065_v50, %v2065_v50 }
  0xb9   : > { %v464_v54 = vsel %vm411_vm0, %v454_v51, 0.0  ;;  %v461_v55 = vsel %vm411_vm0, %v453_v53, 0.0 }
  0xba   : > { %465 = vadd.xlane.f32.xlu0 %v464_v54  ;;  %468 = vadd.xlane.f32.xlu1 %v467_v52 }
  0xbe   : > { %462 = vadd.xlane.f32.xlu1 %v461_v55 }
  0xcf   : > { %717 = vperm.xlu1 %1727, %v703_v57  }
  0xd0   : > { %712 = vperm.xlu0 %1726, %v702_v59  }
  0xd3   : > { %722 = vperm.xlu1 %1727, %v704_v60  }
  0xd7   : > { %727 = vperm.xlu1 %1727, %v705_v61  }
  0xdb   : > { %732 = vperm.xlu1 %1727, %v706_v62  }
  0xdf   : > { %737 = vperm.xlu1 %1727, %v707_v63  }
  0xe3   : > { %742 = vperm.xlu1 %1727, %v708_v3  }
  0xe7   : > { %747 = vperm.xlu1 %1727, %v709_v4  }
 0x137   : > { %v484_v6 = vpop.xlane.xlu0 %483 }
 0x138   : > { %v492_v7 = vmul.f32 0.03125, %v484_v6 }
 0x13a   : > { %v500_v10 = vadd.f32 1e-05, %v492_v7 }
 0x13b   : > { %v478_v11 = vpop.xlane.xlu0 %477  ;;  %v481_v14 = vpop.xlane.xlu1 %480 }
 0x13c   : > { %1728 = vrsqrt.f32 %v500_v10  ;;  %v490_v15 = vmul.f32 0.03125, %v478_v11  ;;  %v491_v16 = vmul.f32 0.03125, %v481_v14  ;;  %v548_v14 = vld [vmem:[%s2536_s3 + $0x10] sm:$0xff] }
 0x13e   : > { %v498_v17 = vadd.f32 1e-05, %v490_v15  ;;  %v499_v18 = vadd.f32 1e-05, %v491_v16  ;;  %v550_v15 = vld [vmem:[%s2536_s3 + $0x20] sm:$0xff]  ;;  %v551_v16 = vld [vmem:[%s2536_s3 + $0x28] sm:$0xff] }
 0x13f   : > { %v472_v19 = vpop.xlane.xlu0 %471  ;;  %v475_v22 = vpop.xlane.xlu1 %474 }
 0x140   : > { %1730 = vrsqrt.f32 %v498_v17  ;;  %v488_v23 = vmul.f32 0.03125, %v472_v19  ;;  %v489_v24 = vmul.f32 0.03125, %v475_v22  ;;  %v552_v17 = vld [vmem:[%s2536_s3 + $0x30] sm:$0xff] }
 0x141   : > { %1732 = vrsqrt.f32 %v499_v18  ;;  %v553_v18 = vld [vmem:[%s2536_s3 + $0x38] sm:$0xff] }
 0x142   : > { %v496_v25 = vadd.f32 1e-05, %v488_v23  ;;  %v497_v26 = vadd.f32 1e-05, %v489_v24 }
 0x143   : > { %v466_v27 = vpop.xlane.xlu0 %465  ;;  %v469_v30 = vpop.xlane.xlu1 %468 }
 0x144   : > { %1734 = vrsqrt.f32 %v496_v25  ;;  %v486_v31 = vmul.f32 0.03125, %v466_v27  ;;  %v487_v32 = vmul.f32 0.03125, %v469_v30 }
 0x145   : > { %1736 = vrsqrt.f32 %v497_v26 }
 0x146   : > { %v494_v33 = vadd.f32 1e-05, %v486_v31  ;;  %v495_v34 = vadd.f32 1e-05, %v487_v32 }
 0x147   : > { %v463_v35 = vpop.xlane.xlu1 %462 }
 0x148   : > { %1738 = vrsqrt.f32 %v494_v33  ;;  %v485_v36 = vmul.f32 0.03125, %v463_v35 }
 0x149   : > { %v1729_v37 = vpop.eup %1728  ;;  %1740 = vrsqrt.f32 %v495_v34 }
 0x14a   : > { %v493_v41 = vadd.f32 1e-05, %v485_v36  ;;  %v516_v42 = vmul.f32 %v1729_v37, %v2027_v20 }
 0x14b   : > { %v718_v19 = vpop.permute.xlu1 %717  ;;  %v713_v31 = vpop.permute.xlu0 %712 }
 0x14c   : > { %1742 = vrsqrt.f32 %v493_v41  ;;  %v530_v44 = vmul.f32 %v1495_v40, %v516_v42 }
 0x14d   : > { %v1731_v45 = vpop.eup %1730 }
 0x14e   : > { %v1733_v46 = vpop.eup %1732  ;;  %v544_v47 = vadd.f32 %v1496_v43, %v530_v44  ;;  %v514_v49 = vmul.f32 %v1731_v45, %v2030_v21 }
 0x14f   : > { %v515_v51 = vmul.f32 %v1733_v46, %v2037_v28  ;;  %v723_v22 = vpop.permute.xlu1 %722 }
 0x150   : > { %1576 = vmatprep.subr.mxu0 %v544_v47  ;;  %v528_v54 = vmul.f32 %v1495_v40, %v514_v49 }
 0x151   : > { %v1735_v52 = vpop.eup %1734  ;;  %1577 = vmatpush3.msra.mxu0 %v544_v47  ;;  %v529_v53 = vmul.f32 %v1495_v40, %v515_v51 }
 0x152   : > { %v1737_v55 = vpop.eup %1736  ;;  %v512_v20 = vmul.f32 %v1735_v52, %v2049_v38  ;;  %v542_v59 = vadd.f32 %v1496_v43, %v528_v54 }
 0x153   : > { %v543_v56 = vadd.f32 %v1496_v43, %v529_v53  ;;  %v513_v57 = vmul.f32 %v1737_v55, %v2040_v29  ;;  %v728_v23 = vpop.permute.xlu1 %727 }
 0x154   : > { %v526_v61 = vmul.f32 %v1495_v40, %v512_v20 }
 0x155   : > { %v1739_v58 = vpop.eup %1738  ;;  %1578 = vmatprep.subr.mxu0 %v543_v56  ;;  %v527_v60 = vmul.f32 %v1495_v40, %v513_v57 }
 0x156   : > { %v1741_v62 = vpop.eup %1740  ;;  %1579 = vmatpush3.msra.mxu0 %v543_v56  ;;  %v510_v21 = vmul.f32 %v1739_v58, %v2061_v48  ;;  %v540_v38 = vadd.f32 %v1496_v43, %v526_v61 }
 0x157   : > { %1580 = vmatprep.subr.mxu0 %v542_v59  ;;  %v541_v28 = vadd.f32 %v1496_v43, %v527_v60  ;;  %v511_v63 = vmul.f32 %v1741_v62, %v2052_v39  ;;  %v547_v39 = vld [vmem:[%s2536_s3 + $0x8] sm:$0xff]  ;;  %v733_v24 = vpop.permute.xlu1 %732 }
 0x158   : > { %1581 = vmatpush3.msra.mxu0 %v542_v59  ;;  %v524_v6 = vmul.f32 %v1495_v40, %v510_v21 }
 0x159   : > { %v1743_v3 = vpop.eup %1742  ;;  %1582 = vmatprep.subr.mxu0 %v541_v28  ;;  %v525_v4 = vmul.f32 %v1495_v40, %v511_v63 }
 0x15a   : > { %1583 = vmatpush3.msra.mxu0 %v541_v28  ;;  %v509_v29 = vmul.f32 %v1743_v3, %v2065_v50  ;;  %v538_v11 = vadd.f32 %v1496_v43, %v524_v6  ;;  %v549_v50 = vld [vmem:[%s2536_s3 + $0x18] sm:$0xff] }
 0x15b   : > { %1584 = vmatprep.subr.mxu0 %v540_v38  ;;  %v539_v7 = vadd.f32 %v1496_v43, %v525_v4  ;;  %v738_v26 = vpop.permute.xlu1 %737 }
 0x15c   : > { %1585 = vmatpush3.msra.mxu0 %v540_v38  ;;  %v523_v10 = vmul.f32 %v1495_v40, %v509_v29 }
 0x15d   : > { %1586 = vmatprep.subr.mxu0 %v539_v7 }
 0x15e   : > { %1587 = vmatpush3.msra.mxu0 %v539_v7  ;;  %v537_v48 = vadd.f32 %v1496_v43, %v523_v10 }
 0x15f   : > { %1588 = vmatprep.subr.mxu0 %v538_v11  ;;  %v743_v43 = vpop.permute.xlu1 %742 }
 0x160   : > { %1589 = vmatpush3.msra.mxu0 %v538_v11 }
 0x161   : > { %1590 = vmatprep.subr.mxu0 %v537_v48 }
 0x162   : > { %1591 = vmatpush3.msra.mxu0 %v537_v48 }
 0x163   : > { %1593 = vmatmul.mubr.msk.f32.vlgmr.msra.gmra.mxu0 %vm554_vm1, %v547_v39  ;;  %v748_v54 = vpop.permute.xlu1 %747 }
 0x164   : > { %1595 = vmatprep.mubr.msk.f32.mxu0 %vm554_vm1, %v548_v14 }
 0x167   : > { %1596 = vmatmul.mubr.msk.f32.gmra.mxu0 %vm554_vm1, %v549_v50 }
 0x168   : > { %1598 = vmatprep.mubr.msk.f32.mxu0 %vm554_vm1, %v550_v15 }
 0x16b   : > { %1599 = vmatmul.mubr.msk.f32.gmra.mxu0 %vm554_vm1, %v551_v16 }
 0x16c   : > { %1601 = vmatprep.mubr.msk.f32.mxu0 %vm554_vm1, %v552_v17 }
 0x16f   : > { %1602 = vmatmul.mubr.msk.f32.gmra.mxu0 %vm554_vm1, %v553_v18 }
 0x223   : > { %v1594_v25 = vpop.f32.mrf.mxu0 }
 0x224   : > { %v694_v27 = vadd.f32 %v1594_v25, %v2018_v12 }
 0x225   : > { %v645_v30 = vpop.f32.mrf.mxu0 }
 0x226   : > { %v2145_v32 = vadd.f32 %v718_v19, %v694_v27  ;;  %v693_v33 = vadd.f32 %v645_v30, %v2020_v13 }
 0x227   : > { %v1597_v34 = vpop.f32.mrf.mxu0 }
 0x228   : > { %v2148_v35 = vadd.f32 %v713_v31, %v693_v33  ;;  %v696_v36 = vadd.f32 %v1597_v34, %v2010_v8  ;;  %v763_v37 = vsel %vm411_vm0, %v2145_v32, 0.0 }
 0x229   : > { %v655_v40 = vpop.f32.mrf.mxu0  ;;  %764 = vadd.xlane.f32.xlu0 %v763_v37 }
 0x22a   : > { %v2153_v41 = vadd.f32 %v728_v23, %v696_v36  ;;  %v695_v12 = vadd.f32 %v655_v40, %v2012_v9  ;;  %v760_v42 = vsel %vm411_vm0, %v2148_v35, 0.0 }
 0x22b   : > { %761 = vadd.xlane.f32.xlu1 %v760_v42  ;;  %v1600_v13 = vpop.f32.mrf.mxu0 }
 0x22c   : > { %v2158_v44 = vadd.f32 %v723_v22, %v695_v12  ;;  %v698_v45 = vadd.f32 %v1600_v13, %v1998_v2  ;;  %v769_v9 = vsel %vm411_vm0, %v2153_v41, 0.0  ;;  %v894_v13 = vld [vmem:[%s2540_s7 + $0x10] sm:$0xff] }
 0x22d   : > { %v665_v8 = vpop.f32.mrf.mxu0 }
 0x22e   : > { %v2161_v46 = vadd.f32 %v738_v26, %v698_v45  ;;  %v697_v47 = vadd.f32 %v665_v8, %v2004_v5  ;;  %v766_v49 = vsel %vm411_vm0, %v2158_v44, 0.0  ;;  %v893_v45 = vld [vmem:[%s2540_s7 + $0x8] sm:$0xff]  ;;  %v892_v8 = vld [vmem:[%s2540_s7] sm:$0xff] }
 0x22f   : > { %v1603_v51 = vpop.f32.mrf.mxu0  ;;  %767 = vadd.xlane.f32.xlu0 %v766_v49  ;;  %770 = vadd.xlane.f32.xlu1 %v769_v9 }
 0x230   : > { %v2168_v52 = vadd.f32 %v733_v24, %v697_v47  ;;  %v700_v53 = vadd.f32 %v1603_v51, %v1994_v0  ;;  %v775_v56 = vsel %vm411_vm0, %v2161_v46, 0.0 }
 0x231   : > { %v675_v2 = vpop.f32.mrf.mxu0 }
 0x232   : > { %v2171_v55 = vadd.f32 %v748_v54, %v700_v53  ;;  %v699_v20 = vadd.f32 %v675_v2, %v1996_v1  ;;  %v772_v5 = vsel %vm411_vm0, %v2168_v52, 0.0 }
 0x233   : > { %773 = vadd.xlane.f32.xlu0 %v772_v5  ;;  %776 = vadd.xlane.f32.xlu1 %v775_v56 }
 0x234   : > { %v2178_v57 = vadd.f32 %v743_v43, %v699_v20  ;;  %v781_v0 = vsel %vm411_vm0, %v2171_v55, 0.0  ;;  %v895_v43 = vld [vmem:[%s2540_s7 + $0x18] sm:$0xff] }
 0x235   : > { %1604 = vmatprep.subr.mxu1 %v895_v43 }
 0x236   : > { %v778_v58 = vsel %vm411_vm0, %v2178_v57, 0.0  ;;  %1605 = vmatpush3.msra.mxu1 %v895_v43 }
 0x237   : > { %779 = vadd.xlane.f32.xlu0 %v778_v58  ;;  %782 = vadd.xlane.f32.xlu1 %v781_v0 }
 0x238   : > { %1606 = vmatprep.subr.mxu1 %v894_v13 }
 0x239   : > { %1607 = vmatpush3.msra.mxu1 %v894_v13 }
 0x23a   : > { %1608 = vmatprep.subr.mxu1 %v893_v45 }
 0x23b   : > { %1609 = vmatpush3.msra.mxu1 %v893_v45 }
 0x23c   : > { %1610 = vmatprep.subr.mxu1 %v892_v8 }
 0x23d   : > { %1611 = vmatpush3.msra.mxu1 %v892_v8 }
 0x2b2   : > { %v765_v59 = vpop.xlane.xlu0 %764 }
 0x2b3   : > { %v785_v1 = vmul.f32 0.03125, %v765_v59 }
 0x2b4   : > { %v762_v60 = vpop.xlane.xlu1 %761 }
 0x2b5   : > { %v2185_v61 = vsub.f32 %v2145_v32, %v785_v1  ;;  %v784_v62 = vmul.f32 0.03125, %v762_v60 }
 0x2b7   : > { %v2188_v21 = vsub.f32 %v2148_v35, %v784_v62  ;;  %v801_v28 = vmul.f32 %v2185_v61, %v2185_v61 }
 0x2b8   : > { %v768_v63 = vpop.xlane.xlu0 %767  ;;  %v771_v3 = vpop.xlane.xlu1 %770 }
 0x2b9   : > { %v786_v38 = vmul.f32 0.03125, %v768_v63  ;;  %v787_v4 = vmul.f32 0.03125, %v771_v3  ;;  %v811_v6 = vsel %vm411_vm0, %v801_v28, 0.0  ;;  %v800_v29 = vmul.f32 %v2188_v21, %v2188_v21 }
 0x2ba   : > { %812 = vadd.xlane.f32.xlu1 %v811_v6 }
 0x2bb   : > { %v2196_v7 = vsub.f32 %v2158_v44, %v786_v38  ;;  %v2199_v10 = vsub.f32 %v2153_v41, %v787_v4  ;;  %v808_v11 = vsel %vm411_vm0, %v800_v29, 0.0 }
 0x2bc   : > { %v774_v48 = vpop.xlane.xlu0 %773  ;;  %809 = vadd.xlane.f32.xlu0 %v808_v11  ;;  %v777_v39 = vpop.xlane.xlu1 %776 }
 0x2bd   : > { %v788_v14 = vmul.f32 0.03125, %v774_v48  ;;  %v789_v50 = vmul.f32 0.03125, %v777_v39  ;;  %v802_v15 = vmul.f32 %v2196_v7, %v2196_v7  ;;  %v803_v16 = vmul.f32 %v2199_v10, %v2199_v10  ;;  %v1505_v39 = vld [vmem:[%s2538_s5] ss:$0 sm:$0xff] }
 0x2bf   : > { %v2207_v17 = vsub.f32 %v2168_v52, %v788_v14  ;;  %v2210_v18 = vsub.f32 %v2161_v46, %v789_v50  ;;  %v814_v19 = vsel %vm411_vm0, %v802_v15, 0.0  ;;  %v817_v22 = vsel %vm411_vm0, %v803_v16, 0.0 }
 0x2c0   : > { %v780_v23 = vpop.xlane.xlu0 %779  ;;  %815 = vadd.xlane.f32.xlu0 %v814_v19  ;;  %818 = vadd.xlane.f32.xlu1 %v817_v22  ;;  %v783_v24 = vpop.xlane.xlu1 %782  ;;  %v1506_v19 = vld [vmem:[%s2539_s6] ss:$0 sm:$0xff] }
 0x2c1   : > { %v790_v25 = vmul.f32 0.03125, %v780_v23  ;;  %v791_v26 = vmul.f32 0.03125, %v783_v24  ;;  %v804_v27 = vmul.f32 %v2207_v17, %v2207_v17  ;;  %v805_v30 = vmul.f32 %v2210_v18, %v2210_v18 }
 0x2c3   : > { %v2219_v31 = vsub.f32 %v2178_v57, %v790_v25  ;;  %v2222_v33 = vsub.f32 %v2171_v55, %v791_v26  ;;  %v820_v34 = vsel %vm411_vm0, %v804_v27, 0.0  ;;  %v823_v36 = vsel %vm411_vm0, %v805_v30, 0.0 }
 0x2c4   : > { %821 = vadd.xlane.f32.xlu0 %v820_v34  ;;  %824 = vadd.xlane.f32.xlu1 %v823_v36 }
 0x2c5   : > { %v806_v37 = vmul.f32 %v2219_v31, %v2219_v31  ;;  %v807_v40 = vmul.f32 %v2222_v33, %v2222_v33 }
 0x2c7   : > { %v826_v12 = vsel %vm411_vm0, %v806_v37, 0.0  ;;  %v829_v42 = vsel %vm411_vm0, %v807_v40, 0.0 }
 0x2c8   : > { %827 = vadd.xlane.f32.xlu0 %v826_v12  ;;  %830 = vadd.xlane.f32.xlu1 %v829_v42 }
 0x343   : > { %v813_v47 = vpop.xlane.xlu1 %812 }
 0x344   : > { %v833_v49 = vmul.f32 0.03125, %v813_v47 }
 0x345   : > { %v810_v9 = vpop.xlane.xlu0 %809 }
 0x346   : > { %v841_v51 = vadd.f32 1e-05, %v833_v49  ;;  %v832_v53 = vmul.f32 0.03125, %v810_v9 }
 0x348   : > { %1744 = vrsqrt.f32 %v841_v51  ;;  %v840_v54 = vadd.f32 1e-05, %v832_v53  ;;  %v1231_v53 = vld [vmem:[%s2542_s9 + $0x38] sm:$0xff] }
 0x349   : > { %v816_v2 = vpop.xlane.xlu0 %815  ;;  %v819_v20 = vpop.xlane.xlu1 %818  ;;  %1624 = vmatprep.subr.mxu0 %v1231_v53  ;;  %1652 = vmatprep.subr.mxu1 %v1231_v53 }
 0x34a   : > { %1746 = vrsqrt.f32 %v840_v54  ;;  %v834_v5 = vmul.f32 0.03125, %v816_v2  ;;  %v835_v56 = vmul.f32 0.03125, %v819_v20  ;;  %1625 = vmatpush3.msra.mxu0 %v1231_v53  ;;  %v1228_v54 = vld [vmem:[%s2542_s9 + $0x20] sm:$0xff]  ;;  %v1227_v2 = vld [vmem:[%s2542_s9 + $0x18] sm:$0xff]  ;;  %v1226_v20 = vld [vmem:[%s2542_s9 + $0x10] sm:$0xff] }
 0x34c   : > { %v842_v58 = vadd.f32 1e-05, %v834_v5  ;;  %v843_v0 = vadd.f32 1e-05, %v835_v56  ;;  %v1225_v5 = vld [vmem:[%s2542_s9 + $0x8] sm:$0xff]  ;;  %v1224_v56 = vld [vmem:[%s2542_s9] sm:$0xff] }
 0x34d   : > { %v822_v59 = vpop.xlane.xlu0 %821  ;;  %v825_v1 = vpop.xlane.xlu1 %824 }
 0x34e   : > { %1748 = vrsqrt.f32 %v842_v58  ;;  %v836_v60 = vmul.f32 0.03125, %v822_v59  ;;  %v837_v62 = vmul.f32 0.03125, %v825_v1  ;;  %v1507_v58 = vld [vmem:[%s2541_s8] ss:$0 sm:$0xff] }
 0x34f   : > { %1750 = vrsqrt.f32 %v843_v0 }
 0x350   : > { %v844_v28 = vadd.f32 1e-05, %v836_v60  ;;  %v845_v63 = vadd.f32 1e-05, %v837_v62 }
 0x351   : > { %v828_v3 = vpop.xlane.xlu0 %827  ;;  %v831_v38 = vpop.xlane.xlu1 %830 }
 0x352   : > { %1752 = vrsqrt.f32 %v844_v28  ;;  %v838_v4 = vmul.f32 0.03125, %v828_v3  ;;  %v839_v6 = vmul.f32 0.03125, %v831_v38 }
 0x353   : > { %1754 = vrsqrt.f32 %v845_v63 }
 0x354   : > { %v846_v29 = vadd.f32 1e-05, %v838_v4  ;;  %v847_v11 = vadd.f32 1e-05, %v839_v6 }
 0x355   : > { %v1745_v48 = vpop.eup %1744 }
 0x356   : > { %1756 = vrsqrt.f32 %v846_v29  ;;  %v857_v14 = vmul.f32 %v1745_v48, %v2185_v61 }
 0x357   : > { %v1747_v50 = vpop.eup %1746  ;;  %1758 = vrsqrt.f32 %v847_v11 }
 0x358   : > { %v856_v15 = vmul.f32 %v1747_v50, %v2188_v21  ;;  %v871_v16 = vmul.f32 %v1505_v39, %v857_v14 }
 0x35a   : > { %v870_v22 = vmul.f32 %v1505_v39, %v856_v15  ;;  %v885_v27 = vadd.f32 %v1506_v19, %v871_v16 }
 0x35b   : > { %v1749_v23 = vpop.eup %1748 }
 0x35c   : > { %v1751_v24 = vpop.eup %1750  ;;  %v884_v25 = vadd.f32 %v1506_v19, %v870_v22  ;;  %v858_v26 = vmul.f32 %v1749_v23, %v2196_v7 }
 0x35d   : > { %v859_v30 = vmul.f32 %v1751_v24, %v2199_v10 }
 0x35e   : > { %1612 = vmatprep.mubr.msk.f32.mxu1 %vm411_vm0, %v884_v25  ;;  %v872_v61 = vmul.f32 %v1505_v39, %v858_v26 }
 0x35f   : > { %v1753_v34 = vpop.eup %1752  ;;  %1613 = vmatmul.mubr.msk.f32.vlgmr.msra.gmra.mxu1 %vm411_vm0, %v885_v27  ;;  %v873_v21 = vmul.f32 %v1505_v39, %v859_v30 }
 0x360   : > { %v1755_v36 = vpop.eup %1754  ;;  %v886_v37 = vadd.f32 %v1506_v19, %v872_v61  ;;  %v860_v40 = vmul.f32 %v1753_v34, %v2207_v17  ;;  %1660 = vmatpush3.msra.mxu1 %v1231_v53 }
 0x361   : > { %v887_v12 = vadd.f32 %v1506_v19, %v873_v21  ;;  %v861_v42 = vmul.f32 %v1755_v36, %v2210_v18 }
 0x362   : > { %1615 = vmatprep.mubr.msk.f32.mxu1 %vm411_vm0, %v886_v37  ;;  %v874_v7 = vmul.f32 %v1505_v39, %v860_v40 }
 0x363   : > { %v1757_v43 = vpop.eup %1756  ;;  %1616 = vmatmul.mubr.msk.f32.gmra.mxu1 %vm411_vm0, %v887_v12  ;;  %v875_v10 = vmul.f32 %v1505_v39, %v861_v42 }
 0x364   : > { %v1759_v13 = vpop.eup %1758  ;;  %v888_v45 = vadd.f32 %v1506_v19, %v874_v7  ;;  %v862_v8 = vmul.f32 %v1757_v43, %v2219_v31  ;;  %v1230_v31 = vld [vmem:[%s2542_s9 + $0x30] sm:$0xff] }
 0x365   : > { %v889_v47 = vadd.f32 %v1506_v19, %v875_v10  ;;  %v863_v49 = vmul.f32 %v1759_v13, %v2222_v33  ;;  %1626 = vmatprep.subr.mxu0 %v1230_v31  ;;  %1653 = vmatprep.subr.mxu1 %v1230_v31  ;;  %v1229_v33 = vld [vmem:[%s2542_s9 + $0x28] sm:$0xff] }
 0x366   : > { %1618 = vmatprep.mubr.msk.f32.mxu1 %vm411_vm0, %v888_v45  ;;  %v876_v17 = vmul.f32 %v1505_v39, %v862_v8  ;;  %1627 = vmatpush3.msra.mxu0 %v1230_v31 }
 0x367   : > { %1619 = vmatmul.mubr.msk.f32.gmra.mxu1 %vm411_vm0, %v889_v47  ;;  %v877_v18 = vmul.f32 %v1505_v39, %v863_v49  ;;  %1628 = vmatprep.subr.mxu0 %v1229_v33 }
 0x368   : > { %v890_v9 = vadd.f32 %v1506_v19, %v876_v17  ;;  %1661 = vmatpush3.msra.mxu1 %v1230_v31  ;;  %1629 = vmatpush3.msra.mxu0 %v1229_v33 }
 0x369   : > { %v891_v51 = vadd.f32 %v1506_v19, %v877_v18  ;;  %1654 = vmatprep.subr.mxu1 %v1229_v33  ;;  %1630 = vmatprep.subr.mxu0 %v1228_v54 }
 0x36a   : > { %1621 = vmatprep.mubr.msk.f32.mxu1 %vm411_vm0, %v890_v9  ;;  %1662 = vmatpush3.msra.mxu1 %v1229_v33 }
 0x36b   : > { %1622 = vmatmul.mubr.msk.f32.gmra.mxu1 %vm411_vm0, %v891_v51  ;;  %1655 = vmatprep.subr.mxu1 %v1228_v54 }
 0x36c   : > { %1631 = vmatpush3.msra.mxu0 %v1228_v54  ;;  %1663 = vmatpush3.msra.mxu1 %v1228_v54 }
 0x36d   : > { %1632 = vmatprep.subr.mxu0 %v1227_v2  ;;  %1656 = vmatprep.subr.mxu1 %v1227_v2 }
 0x36e   : > { %1633 = vmatpush3.msra.mxu0 %v1227_v2  ;;  %1664 = vmatpush3.msra.mxu1 %v1227_v2 }
 0x36f   : > { %1634 = vmatprep.subr.mxu0 %v1226_v20  ;;  %1657 = vmatprep.subr.mxu1 %v1226_v20 }
 0x370   : > { %1635 = vmatpush3.msra.mxu0 %v1226_v20  ;;  %1665 = vmatpush3.msra.mxu1 %v1226_v20 }
 0x371   : > { %1636 = vmatprep.subr.mxu0 %v1225_v5  ;;  %1658 = vmatprep.subr.mxu1 %v1225_v5 }
 0x372   : > { %1637 = vmatpush3.msra.mxu0 %v1225_v5  ;;  %1666 = vmatpush3.msra.mxu1 %v1225_v5 }
 0x373   : > { %1638 = vmatprep.subr.mxu0 %v1224_v56  ;;  %1659 = vmatprep.subr.mxu1 %v1224_v56 }
 0x374   : > { %1639 = vmatpush3.msra.mxu0 %v1224_v56  ;;  %1667 = vmatpush3.msra.mxu1 %v1224_v56 }
 0x41f   : > { %v1614_v0 = vpop.f32.mrf.mxu1 }
 0x420   : > { %v999_v59 = vadd.f32 %v1614_v0, %v1507_v58 }
 0x421   : > { %v993_v1 = vpop.f32.mrf.mxu1 }
 0x422   : > { %v1033_v60 = vand.u32 2147483647, %v999_v59  ;;  %v2293_v62 = vadd.f32 %v1507_v58, %v993_v1 }
 0x423   : > { %v1617_v28 = vpop.f32.mrf.mxu1 }
 0x424   : > { %v1041_v63 = vmul.f32 0.70710677, %v1033_v60  ;;  %v2296_v3 = vand.u32 2147483647, %v2293_v62  ;;  %v2298_v38 = vadd.f32 %v1617_v28, %v1507_v58  ;;  %v1185_v47 = vadd.f32 %v1033_v60, %v999_v59 }
 0x425   : > { %v1003_v4 = vpop.f32.mrf.mxu1  ;;  %v2339_v56 = vmul.f32 0.5, %v1033_v60 }
 0x426   : > { %v1049_v6 = vmul.f32 0.3275911, %v1041_v63  ;;  %v1040_v29 = vmul.f32 0.70710677, %v2296_v3  ;;  %v2302_v11 = vand.u32 2147483647, %v2298_v38  ;;  %v2304_v48 = vadd.f32 %v1507_v58, %v1003_v4 }
 0x427   : > { %v1620_v39 = vpop.f32.mrf.mxu1  ;;  %v1145_v61 = vsub.f32 0.0, %v1041_v63  ;;  %v2337_v5 = vmul.f32 0.5, %v1185_v47 }
 0x428   : > { %v1057_v14 = vadd.f32 1.0, %v1049_v6  ;;  %v1048_v50 = vmul.f32 0.3275911, %v1040_v29  ;;  %v1043_v15 = vmul.f32 0.70710677, %v2302_v11  ;;  %v2310_v24 = vadd.f32 %v1620_v39, %v1507_v58 }
 0x429   : > { %v1013_v19 = vpop.f32.mrf.mxu1  ;;  %v2308_v23 = vand.u32 2147483647, %v2304_v48  ;;  %v1153_v7 = vmul.f32 %v1145_v61, %v1041_v63  ;;  %v1144_v43 = vsub.f32 0.0, %v1040_v29 }
 0x42a   : > { %1760 = vrcp.f32 %v1057_v14  ;;  %v1056_v16 = vadd.f32 1.0, %v1048_v50  ;;  %v1051_v22 = vmul.f32 0.3275911, %v1043_v15  ;;  %v2313_v27 = vadd.f32 %v1507_v58, %v1013_v19 }
 0x42b   : > { %v1042_v26 = vmul.f32 0.70710677, %v2308_v23  ;;  %v2316_v30 = vand.u32 2147483647, %v2310_v24  ;;  %v1623_v21 = vpop.f32.mrf.mxu1  ;;  %v1147_v17 = vsub.f32 0.0, %v1043_v15  ;;  %v1152_v53 = vmul.f32 %v1144_v43, %v1040_v29 }
 0x42c   : > { %1762 = vrcp.f32 %v1056_v16  ;;  %v1059_v25 = vadd.f32 1.0, %v1051_v22  ;;  %v2320_v40 = vand.u32 2147483647, %v2313_v27  ;;  %v2322_v42 = vadd.f32 %v1623_v21, %v1507_v58 }
 0x42d   : > { %v1050_v34 = vmul.f32 0.3275911, %v1042_v26  ;;  %v1045_v36 = vmul.f32 0.70710677, %v2316_v30  ;;  %v1023_v8 = vpop.f32.mrf.mxu1  ;;  %v1162_v51 = vmul.f32 1.442695, %v1153_v7  ;;  %v1155_v28 = vmul.f32 %v1147_v17, %v1043_v15 }
 0x42e   : > { %1764 = vrcp.f32 %v1059_v25  ;;  %v1044_v10 = vmul.f32 0.70710677, %v2320_v40  ;;  %v2326_v45 = vand.u32 2147483647, %v2322_v42  ;;  %v2333_v33 = vadd.f32 %v1507_v58, %v1023_v8 }
 0x42f   : > { %v1058_v37 = vadd.f32 1.0, %v1050_v34  ;;  %v1053_v12 = vmul.f32 0.3275911, %v1045_v36  ;;  %v1146_v2 = vsub.f32 0.0, %v1042_v26  ;;  %v1149_v63 = vsub.f32 0.0, %v1045_v36 }
 0x430   : > { %v1052_v49 = vmul.f32 0.3275911, %v1044_v10  ;;  %v2329_v18 = vmul.f32 0.70710677, %v2326_v45  ;;  %v2342_v0 = vand.u32 2147483647, %v2333_v33  ;;  %v1184_v25 = vadd.f32 %v2296_v3, %v2293_v62 }
 0x431   : > { %1766 = vrcp.f32 %v1058_v37  ;;  %v1061_v13 = vadd.f32 1.0, %v1053_v12  ;;  %v1160_v6 = vmul.f32 1.442695, %v1152_v53  ;;  %v1154_v14 = vmul.f32 %v1146_v2, %v1042_v26 }
 0x432   : > { %v1060_v31 = vadd.f32 1.0, %v1052_v49  ;;  %v1055_v20 = vmul.f32 0.3275911, %v2329_v18  ;;  %v2348_v29 = vmul.f32 0.70710677, %v2342_v0  ;;  %v1148_v50 = vsub.f32 0.0, %v1044_v10 }
 0x433   : > { %1768 = vrcp.f32 %v1061_v13  ;;  %v1166_v61 = vmul.f32 1.442695, %v1155_v28  ;;  %v1157_v34 = vmul.f32 %v1149_v63, %v1045_v36  ;;  %v2362_v43 = vmul.f32 0.5, %v2296_v3 }
 0x434   : > { %1770 = vrcp.f32 %v1060_v31  ;;  %v1063_v58 = vadd.f32 1.0, %v1055_v20  ;;  %v1054_v15 = vmul.f32 0.3275911, %v2348_v29  ;;  %v1164_v13 = vmul.f32 1.442695, %v1154_v14 }
 0x435   : > { %1772 = vpow2.f32 %v1162_v51  ;;  %v1156_v8 = vmul.f32 %v1148_v50, %v1044_v10  ;;  %v2366_v17 = vmul.f32 0.5, %v1184_v25  ;;  %v1170_v51 = vmul.f32 1.442695, %v1157_v34 }
 0x436   : > { %1774 = vrcp.f32 %v1063_v58  ;;  %v1062_v12 = vadd.f32 1.0, %v1054_v15  ;;  %v2373_v3 = vadd.f32 %v2302_v11, %v2298_v38  ;;  %v1151_v28 = vsub.f32 0.0, %v2329_v18 }
 0x437   : > { %v2331_v9 = vpop.eup %1760  ;;  %1776 = vpow2.f32 %v1160_v6  ;;  %v1150_v38 = vsub.f32 0.0, %v2348_v29 }
 0x438   : > { %v1073_v54 = vmul.f32 1.0614054, %v2331_v9  ;;  %1778 = vrcp.f32 %v1062_v12  ;;  %v1159_v34 = vmul.f32 %v1151_v28, %v2329_v18 }
 0x439   : > { %v2344_v59 = vpop.eup %1762  ;;  %1780 = vpow2.f32 %v1166_v61 }
 0x43a   : > { %v1081_v1 = vadd.f32 -1.4531521, %v1073_v54  ;;  %v1072_v4 = vmul.f32 1.0614054, %v2344_v59  ;;  %1782 = vpow2.f32 %v1164_v13 }
 0x43b   : > { %v2350_v39 = vpop.eup %1764  ;;  %1784 = vpow2.f32 %v1170_v51 }
 0x43c   : > { %v1089_v60 = vmul.f32 %v2331_v9, %v1081_v1  ;;  %v1080_v16 = vadd.f32 -1.4531521, %v1072_v4  ;;  %v1075_v19 = vmul.f32 1.0614054, %v2350_v39  ;;  %v1168_v1 = vmul.f32 1.442695, %v1156_v8 }
 0x43e   : > { %v1097_v22 = vadd.f32 1.4214138, %v1089_v60  ;;  %v1088_v21 = vmul.f32 %v2344_v59, %v1080_v16  ;;  %v1083_v37 = vadd.f32 -1.4531521, %v1075_v19  ;;  %v2358_v7 = vpop.eup %1766  ;;  %1786 = vpow2.f32 %v1168_v1 }
 0x43f   : > { %v1074_v62 = vmul.f32 1.0614054, %v2358_v7 }
 0x440   : > { %v1105_v26 = vmul.f32 %v2331_v9, %v1097_v22  ;;  %v1096_v47 = vadd.f32 1.4214138, %v1088_v21  ;;  %v1091_v49 = vmul.f32 %v2350_v39, %v1083_v37  ;;  %v2368_v53 = vpop.eup %1768 }
 0x441   : > { %v1082_v10 = vadd.f32 -1.4531521, %v1074_v62  ;;  %v1077_v20 = vmul.f32 1.0614054, %v2368_v53  ;;  %v2380_v6 = vpop.eup %1770  ;;  %v1158_v62 = vmul.f32 %v1150_v38, %v2348_v29 }
 0x442   : > { %v1113_v36 = vadd.f32 -0.28449672, %v1105_v26  ;;  %v1104_v31 = vmul.f32 %v2344_v59, %v1096_v47  ;;  %v1099_v54 = vadd.f32 1.4214138, %v1091_v49  ;;  %v1076_v15 = vmul.f32 1.0614054, %v2380_v6  ;;  %v1773_v22 = vpop.eup %1772 }
 0x443   : > { %v1090_v4 = vmul.f32 %v2358_v7, %v1082_v10  ;;  %v1085_v14 = vadd.f32 -1.4531521, %v1077_v20  ;;  %v2388_v21 = vpop.eup %1774  ;;  %v1174_v20 = vmul.f32 1.442695, %v1159_v34 }
 0x444   : > { %v1121_v2 = vmul.f32 %v2331_v9, %v1113_v36  ;;  %v1112_v63 = vadd.f32 -0.28449672, %v1104_v31  ;;  %v1107_v58 = vmul.f32 %v2350_v39, %v1099_v54  ;;  %v1084_v13 = vadd.f32 -1.4531521, %v1076_v15  ;;  %v1777_v31 = vpop.eup %1776 }
 0x445   : > { %v1098_v19 = vadd.f32 1.4214138, %v1090_v4  ;;  %v1093_v61 = vmul.f32 %v2368_v53, %v1085_v14  ;;  %v1079_v49 = vmul.f32 1.0614054, %v2388_v21  ;;  %v1203_v54 = vmul.f32 0.5, %v2302_v11  ;;  %v2400_v29 = vpop.eup %1778 }
 0x446   : > { %v1129_v60 = vadd.f32 0.2548296, %v1121_v2  ;;  %v1120_v50 = vmul.f32 %v2344_v59, %v1112_v63  ;;  %v1115_v16 = vadd.f32 -0.28449672, %v1107_v58  ;;  %v1092_v18 = vmul.f32 %v2380_v6, %v1084_v13  ;;  %v1781_v14 = vpop.eup %1780 }
 0x447   : > { %v1106_v26 = vmul.f32 %v2358_v7, %v1098_v19  ;;  %v1101_v47 = vadd.f32 1.4214138, %v1093_v61  ;;  %v1087_v2 = vadd.f32 -1.4531521, %v1079_v49  ;;  %v1186_v4 = vadd.f32 %v2308_v23, %v2304_v48  ;;  %v1783_v34 = vpop.eup %1782 }
 0x448   : > { %v1137_v25 = vmul.f32 %v2331_v9, %v1129_v60  ;;  %v1128_v37 = vadd.f32 0.2548296, %v1120_v50  ;;  %v1123_v12 = vmul.f32 %v2350_v39, %v1115_v16  ;;  %v1100_v58 = vadd.f32 1.4214138, %v1092_v18  ;;  %v1785_v13 = vpop.eup %1784 }
 0x449   : > { %v1114_v51 = vadd.f32 -0.28449672, %v1106_v26  ;;  %v1109_v10 = vmul.f32 %v2368_v53, %v1101_v47  ;;  %v1095_v11 = vmul.f32 %v2388_v21, %v1087_v2  ;;  %1788 = vpow2.f32 %v1174_v20 }
 0x44a   : > { %v1177_v8 = vmul.f32 %v1773_v22, %v1137_v25  ;;  %v1136_v9 = vmul.f32 %v2344_v59, %v1128_v37  ;;  %v1131_v36 = vadd.f32 0.2548296, %v1123_v12  ;;  %v1108_v16 = vmul.f32 %v2380_v6, %v1100_v58 }
 0x44b   : > { %v1122_v63 = vmul.f32 %v2358_v7, %v1114_v51  ;;  %v1117_v60 = vadd.f32 -0.28449672, %v1109_v10  ;;  %v1103_v22 = vadd.f32 1.4214138, %v1095_v11  ;;  %v1078_v25 = vmul.f32 1.0614054, %v2400_v29 }
 0x44c   : > { %v1176_v1 = vmul.f32 %v1777_v31, %v1136_v9  ;;  %v1139_v28 = vmul.f32 %v2350_v39, %v1131_v36  ;;  %v1209_v59 = vmul.f32 %v2339_v56, %v1177_v8  ;;  %v1172_v39 = vmul.f32 1.442695, %v1158_v62 }
 0x44d   : > { %v1130_v50 = vadd.f32 0.2548296, %v1122_v63  ;;  %v1125_v15 = vmul.f32 %v2368_v53, %v1117_v60  ;;  %v1116_v61 = vadd.f32 -0.28449672, %v1108_v16  ;;  %v1111_v12 = vmul.f32 %v2388_v21, %v1103_v22 }
 0x44e   : > { %v1208_v38 = vmul.f32 %v2362_v43, %v1176_v1  ;;  %v1179_v19 = vmul.f32 %v1781_v14, %v1139_v28  ;;  %v1217_v37 = vsub.f32 %v2337_v5, %v1209_v59  ;;  %v1086_v26 = vadd.f32 -1.4531521, %v1078_v25  ;;  %v1787_v5 = vpop.eup %1786 }
 0x44f   : > { %v1138_v48 = vmul.f32 %v2358_v7, %v1130_v50  ;;  %v1133_v43 = vadd.f32 0.2548296, %v1125_v15  ;;  %v1202_v47 = vmul.f32 0.5, %v2308_v23  ;;  %v1124_v49 = vmul.f32 %v2380_v6, %v1116_v61 }
 0x450   : > { %v1216_v56 = vsub.f32 %v2366_v17, %v1208_v38  ;;  %1790 = vpow2.f32 %v1172_v39  ;;  %v1211_v17 = vmul.f32 %v1203_v54, %v1179_v19  ;;  %v1119_v62 = vadd.f32 -0.28449672, %v1111_v12 }
 0x451   : > { %v1178_v8 = vmul.f32 %v1783_v34, %v1138_v48  ;;  %v1141_v7 = vmul.f32 %v2368_v53, %v1133_v43  ;;  %v1094_v9 = vmul.f32 %v2400_v29, %v1086_v26  ;;  %v1194_v36 = vmul.f32 0.5, %v1186_v4 }
 0x452   : > { %1640 = vmatprep.mubr.msk.f32.mxu0 %vm554_vm1, %v1216_v56  ;;  %v1132_v18 = vadd.f32 0.2548296, %v1124_v49  ;;  %v1195_v31 = vmul.f32 0.5, %v2373_v3  ;;  %v1127_v10 = vmul.f32 %v2388_v21, %v1119_v62  ;;  %v1189_v54 = vadd.f32 %v2316_v30, %v2310_v24 }
 0x453   : > { %1641 = vmatmul.mubr.msk.f32.vlgmr.msra.gmra.mxu0 %vm554_vm1, %v1217_v37  ;;  %v1210_v51 = vmul.f32 %v1202_v47, %v1178_v8  ;;  %v1181_v23 = vmul.f32 %v1785_v13, %v1141_v7  ;;  %v1102_v2 = vadd.f32 1.4214138, %v1094_v9  ;;  %v1188_v1 = vadd.f32 %v2320_v40, %v2313_v27 }
 0x454   : > { %v1140_v53 = vmul.f32 %v2380_v6, %v1132_v18  ;;  %v1219_v28 = vsub.f32 %v1195_v31, %v1211_v17  ;;  %v1205_v63 = vmul.f32 0.5, %v2316_v30  ;;  %v1135_v58 = vadd.f32 0.2548296, %v1127_v10 }
 0x455   : > { %v1218_v20 = vsub.f32 %v1194_v36, %v1210_v51  ;;  %v1110_v59 = vmul.f32 %v2400_v29, %v1102_v2  ;;  %v1204_v4 = vmul.f32 0.5, %v2320_v40  ;;  %v1196_v24 = vmul.f32 0.5, %v1188_v1 }
 0x456   : > { %v1180_v3 = vmul.f32 %v1787_v5, %v1140_v53  ;;  %v1213_v60 = vmul.f32 %v1205_v63, %v1181_v23  ;;  %v1143_v14 = vmul.f32 %v2388_v21, %v1135_v58  ;;  %v1197_v27 = vmul.f32 0.5, %v1189_v54  ;;  %v1789_v50 = vpop.eup %1788 }
 0x457   : > { %1643 = vmatprep.mubr.msk.f32.mxu1 %vm554_vm1, %v1218_v20  ;;  %v1118_v11 = vadd.f32 -0.28449672, %v1110_v59  ;;  %v1190_v22 = vadd.f32 %v2342_v0, %v2333_v33  ;;  %v1191_v21 = vadd.f32 %v2326_v45, %v2322_v42  ;;  %v1207_v25 = vmul.f32 0.5, %v2326_v45  ;;  %v1524_v42 = vld [vmem:[%s2543_s10] ss:$0 sm:$0xff] }
 0x458   : > { %1644 = vmatmul.mubr.msk.f32.vlgmr.msra.gmra.mxu1 %vm554_vm1, %v1219_v28  ;;  %v1212_v6 = vmul.f32 %v1204_v4, %v1180_v3  ;;  %v1221_v16 = vsub.f32 %v1197_v27, %v1213_v60  ;;  %v1183_v19 = vmul.f32 %v1789_v50, %v1143_v14  ;;  %v1206_v48 = vmul.f32 0.5, %v2342_v0 }
 0x459   : > { %v1126_v38 = vmul.f32 %v2400_v29, %v1118_v11  ;;  %v1198_v34 = vmul.f32 0.5, %v1190_v22  ;;  %v1199_v43 = vmul.f32 0.5, %v1191_v21 }
 0x45a   : > { %v1220_v30 = vsub.f32 %v1196_v24, %v1212_v6  ;;  %v1215_v61 = vmul.f32 %v1207_v25, %v1183_v19 }
 0x45b   : > { %v1134_v39 = vadd.f32 0.2548296, %v1126_v38 }
 0x45c   : > { %1646 = vmatprep.mubr.msk.f32.mxu1 %vm554_vm1, %v1220_v30 }
 0x45d   : > { %v1791_v40 = vpop.eup %1790  ;;  %v1142_v15 = vmul.f32 %v2400_v29, %v1134_v39  ;;  %1647 = vmatmul.mubr.msk.f32.gmra.mxu1 %vm554_vm1, %v1221_v16  ;;  %v1223_v29 = vsub.f32 %v1199_v43, %v1215_v61 }
 0x45f   : > { %v1182_v56 = vmul.f32 %v1791_v40, %v1142_v15 }
 0x461   : > { %v1214_v37 = vmul.f32 %v1206_v48, %v1182_v56 }
 0x463   : > { %v1222_v12 = vsub.f32 %v1198_v34, %v1214_v37 }
 0x465   : > { %1649 = vmatprep.mubr.msk.f32.mxu1 %vm554_vm1, %v1222_v12 }
 0x466   : > { %1650 = vmatmul.mubr.msk.f32.gmra.mxu1 %vm554_vm1, %v1223_v29 }
 0x513   : > { %v1642_v33 = vpop.f32.mrf.mxu0 }
 0x514   : > { %v1362_v45 = vadd.f32 %v1642_v33, %v2145_v32 }
 0x515   : > { %v1322_v0 = vpop.f32.mrf.mxu0 }
 0x516   : > { %v1377_v26 = vadd.f32 %v1524_v42, %v1362_v45  ;;  %v1361_v13 = vadd.f32 %v1322_v0, %v2148_v35 }
 0x518   : > { %1385 = vst.msk [vmem:[%s2453_s23 + $0x8] sm:$0xff] %vm411_vm0, %v1377_v26  ;;  %v1376_v8 = vadd.f32 %v1524_v42, %v1361_v13  ;;  %v1645_v47 = vpop.f32.mrf.mxu1 }
 0x519   : > { %v1364_v32 = vadd.f32 %v1645_v47, %v2153_v41 }
 0x51a   : > { %1384 = vst.msk [vmem:[%s2453_s23] sm:$0xff] %vm411_vm0, %v1376_v8  ;;  %v1332_v49 = vpop.f32.mrf.mxu1 }
 0x51b   : > { %v1379_v17 = vadd.f32 %v1524_v42, %v1364_v32  ;;  %v1363_v35 = vadd.f32 %v1332_v49, %v2158_v44 }
 0x51d   : > { %1387 = vst.msk [vmem:[%s2453_s23 + $0x18] sm:$0xff] %vm411_vm0, %v1379_v17  ;;  %v1378_v7 = vadd.f32 %v1524_v42, %v1363_v35  ;;  %v1648_v62 = vpop.f32.mrf.mxu1 }
 0x51e   : > { %v1366_v9 = vadd.f32 %v1648_v62, %v2161_v46 }
 0x51f   : > { %1386 = vst.msk [vmem:[%s2453_s23 + $0x10] sm:$0xff] %vm411_vm0, %v1378_v7  ;;  %v1342_v5 = vpop.f32.mrf.mxu1 }
 0x520   : > { %v1381_v36 = vadd.f32 %v1524_v42, %v1366_v9  ;;  %v1365_v41 = vadd.f32 %v1342_v5, %v2168_v52 }
 0x522   : > { %1389 = vst.msk [vmem:[%s2453_s23 + $0x28] sm:$0xff] %vm411_vm0, %v1381_v36  ;;  %v1380_v51 = vadd.f32 %v1524_v42, %v1365_v41 }
 0x524   : > { %1388 = vst.msk [vmem:[%s2453_s23 + $0x20] sm:$0xff] %vm411_vm0, %v1380_v51 }
 0x526   : > { %v1651_v44 = vpop.f32.mrf.mxu1 }
 0x527   : > { %v1368_v18 = vadd.f32 %v1651_v44, %v2171_v55 }
 0x528   : > { %v1352_v31 = vpop.f32.mrf.mxu1 }
 0x529   : > { %v1383_v46 = vadd.f32 %v1524_v42, %v1368_v18  ;;  %v1367_v23 = vadd.f32 %v1352_v31, %v2178_v57 }
 0x52b   : > { %1391 = vst.msk [vmem:[%s2453_s23 + $0x38] sm:$0xff] %vm411_vm0, %v1383_v46  ;;  %v1382_v52 = vadd.f32 %v1524_v42, %v1367_v23 }
 0x52d   : > { %1390 = vst.msk [vmem:[%s2453_s23 + $0x30] sm:$0xff] %vm411_vm0, %v1382_v52 }
 0x52e   : > { %1805 = shalt.err (!%p1802_p5)
}
 0x52f   : > { %s1806_s14 = scalar_lea.hbm %s2478_s13, 1024  ;;  %s1810_s12 = scalar_lea.hbm %s2544_s11, 2048 }
 0x530   : > { %p1807_p6 = scmp.ne.s32.totalorder %s2478_s13, %s1806_s14  ;;  %p1811_p10 = scmp.lt.s32.totalorder %s2478_s13, %s2544_s11 }
 0x531   : > { %p1812_p11 = scmp.lt.s32.totalorder %s1810_s12, %s1806_s14 }
 0x532   : > { %p1808_p7 = pnand %p1807_p6, %p1974_p4 }
 0x533   : > { %p1813_p12 = por %p1812_p11, %p1811_p10 }
 0x534   : > { %p1809_p9 = pneg %p1808_p7 }
 0x536   : > { %p1814_p13 = pnand %p1813_p12, %p1809_p9 }
 0x538   : > { %1817 = shalt.err (!%p1814_p13)
}
 0x539   : > { %s1872_s15 = smov 128   ;;  %s1873_s16 = smov 8  }
 0x53a   : > { %1668 = dma.vmem_to_hbm [thread:$0]  (%p1974_p4), %s2480_s26, 1024, %s2478_s13, %s2488_s20, %s1872_s15, %s1872_s15, %s1873_s16  }
 0x53b PF: > { %p1674_p0 = scmp.ge.s32.totalorder %s1868_s22, 2  ;;  %s1423_s24 = sand.u32 1, %s1848_s17  }
 0x53c   : > { %s1424_s1 = scalar_lea.sflag [#allocation3], %s1423_s24 }
 0x53d   : > { %p1671_p1 = pnand %p1674_p0, %p1981_p8 }
 0x53f   : > { %p1672_p2 = pneg %p1671_p1 }
 0x541   : > { %1843 = dma.done.wait (%p1672_p2), %s1424_s1, 1024  }
 0x542   : > { %1845 = vsyncadd (%p1672_p2), %s1424_s1, 4294966272  ;;  %s24_s22 = sadd.s32 1, %s1868_s22   ;;  %s2551_s17 = smov %s1852_s18 }
 0x543   : > { %p21_p3 = scmp.ge.s32.totalorder %s24_s22, 4   ;;  %s2552_s18 = smov %s1856_s19 }
 0x544   : > { %s2553_s19 = smov %s1987_s30  ;;  %s2554_s20 = smov %s1864_s21 }
 0x545   : > { %s2555_s21 = smov %s2557_s25  ;;  %23 = sbr.rel (!%p21_p3) target bundleno = 7 (0x7), region = 102 }
 0x54a   :  { %1429 = vsyncpa [#allocation3], 1 }
 0x54b   :  { %1431 = vsyncpa [#allocation3 + $0x1], 1 }

</bundles_post_ra>
